<compile_context>
chip_gen: v5e
topology: v5e:2x2
jax: 0.10.0
libtpu: 0.0.40
codegen_flags: <defaults>
</compile_context>

<pallas_src>
import functools

import jax
import jax.numpy as jnp
from jax.experimental import pallas as pl
from jax.experimental.pallas import tpu as pltpu


_VMEM_BUDGET_BYTES = 8 * 1024 * 1024   # double-buffered in+out per grid step
_MAX_COPIES_PER_STEP = 64              # cap on static copy unroll in the body


# ------------------------- sub-32-bit dtype packing ---------------------------
def _pack_last_to_u32(x):
    """Bitcast groups along the last (W) axis to uint32 for sub-32-bit dtypes."""
    itemsize = jnp.dtype(x.dtype).itemsize
    if itemsize >= 4:
        return x, None
    ratio = 4 // itemsize
    if x.shape[-1] % ratio != 0:
        # TODO(synk): odd trailing dim for a sub-32-bit dtype; fall back to the
        # unpacked (packed-sublane layout, slower) path.
        return x, None
    xr = x.reshape(*x.shape[:-1], x.shape[-1] // ratio, ratio)
    return jax.lax.bitcast_convert_type(xr, jnp.uint32), (x.dtype, ratio)


def _unpack_last_from_u32(y, meta):
    if meta is None:
        return y
    dtype, ratio = meta
    yr = jax.lax.bitcast_convert_type(y, dtype)          # (..., Wp, ratio)
    return yr.reshape(*yr.shape[:-2], yr.shape[-2] * ratio)


def _pick_channel_block(n_units, bytes_per_unit, copies_per_unit):
    """Largest divisor of n_units that fits the VMEM budget and unroll cap."""
    best = 1
    for cb in range(1, n_units + 1):
        if n_units % cb:
            continue
        if cb * copies_per_unit > _MAX_COPIES_PER_STEP:
            break
        if 2 * cb * bytes_per_unit <= _VMEM_BUDGET_BYTES:   # x2: double buffer
            best = cb
    return best


# ----------------------------------- kernels ----------------------------------
def _squeeze_kernel(x_ref, o_ref, *, c_blk, factor, w):
    # x_ref: (1, c_blk, H//f, f*w)   lane-dense view of the input planes
    # o_ref: (1, c_blk*f, H//f, w)
    for c in range(c_blk):
        for j in range(factor):
            o_ref[0, c * factor + j, :, :] = x_ref[0, c, :, j * w:(j + 1) * w]


def _unsqueeze_kernel(x_ref, o_ref, *, c_blk, factor, w):
    # x_ref: (1, c_blk*f, H, w)
    # o_ref: (1, c_blk, H, f*w)     lane-dense view of the output planes
    for c in range(c_blk):
        for j in range(factor):
            o_ref[0, c, :, j * w:(j + 1) * w] = x_ref[0, c * factor + j, :, :]


# ----------------------------------- wrappers ---------------------------------
def squeeze2d(x, factor=2):
    assert factor >= 1 and isinstance(factor, int)
    if factor == 1:
        return x
    B, C, H, W = x.shape
    assert H % factor == 0, (H, W)
    x_p, meta = _pack_last_to_u32(x)
    Wp = x_p.shape[-1]
    itemsize = jnp.dtype(x_p.dtype).itemsize
    h_out = H // factor
    x_view = x_p.reshape(B, C, h_out, factor * Wp)        # free, contiguous

    bytes_per_channel = 2 * H * Wp * itemsize             # in + out, one channel
    c_blk = _pick_channel_block(C, bytes_per_channel, factor)
    grid = (B, C // c_blk)

    kernel = functools.partial(_squeeze_kernel, c_blk=c_blk, factor=factor, w=Wp)
    y_p = pl.pallas_call(
        kernel,
        out_shape=jax.ShapeDtypeStruct((B, C * factor, h_out, Wp), x_p.dtype),
        grid=grid,
        in_specs=[pl.BlockSpec((1, c_blk, h_out, factor * Wp),
                               lambda b, cb: (b, cb, 0, 0))],
        out_specs=pl.BlockSpec((1, c_blk * factor, h_out, Wp),
                               lambda b, cb: (b, cb, 0, 0)),
        compiler_params=pltpu.CompilerParams(
            dimension_semantics=("parallel", "parallel")),
    )(x_view)
    return _unpack_last_from_u32(y_p, meta)


def unsqueeze2d(x, factor=2):
    assert factor >= 1 and isinstance(factor, int)
    if factor == 1:
        return x
    B, C, H, W = x.shape
    assert C % factor == 0, C
    c_out = C // factor
    x_p, meta = _pack_last_to_u32(x)
    Wp = x_p.shape[-1]
    itemsize = jnp.dtype(x_p.dtype).itemsize

    bytes_per_out_channel = 2 * factor * H * Wp * itemsize
    c_blk = _pick_channel_block(c_out, bytes_per_out_channel, factor)
    grid = (B, c_out // c_blk)

    kernel = functools.partial(_unsqueeze_kernel, c_blk=c_blk, factor=factor, w=Wp)
    y_view = pl.pallas_call(
        kernel,
        out_shape=jax.ShapeDtypeStruct((B, c_out, H, factor * Wp), x_p.dtype),
        grid=grid,
        in_specs=[pl.BlockSpec((1, c_blk * factor, H, Wp),
                               lambda b, cb: (b, cb, 0, 0))],
        out_specs=pl.BlockSpec((1, c_blk, H, factor * Wp),
                               lambda b, cb: (b, cb, 0, 0)),
        compiler_params=pltpu.CompilerParams(
            dimension_semantics=("parallel", "parallel")),
    )(x_p)
    y_p = y_view.reshape(B, c_out, H * factor, Wp)        # free, contiguous
    return _unpack_last_from_u32(y_p, meta)


# ------------------------------------ module ----------------------------------
class SqueezeLayer:
    """Pallas port of SqueezeLayer (no learnable parameters)."""

    def __init__(self, factor):
        self.factor = factor

    def __call__(self, x, cond=None, logdet=None, reverse=False):
        fn = unsqueeze2d if reverse else squeeze2d
        out = fn(x, self.factor)
        cond_out = fn(cond, self.factor) if cond is not None else None
        return out, cond_out, logdet

    def squeeze_cond(self, cond):
        return squeeze2d(cond, self.factor)


# ---- pure-JAX references (mirror the PyTorch view/permute math) ---------------
def _squeeze2d_ref(x, f):
    B, C, H, W = x.shape
    return (x.reshape(B, C, H // f, f, W)
             .transpose(0, 1, 3, 2, 4)
             .reshape(B, C * f, H // f, W))


def _unsqueeze2d_ref(x, f):
    B, C, H, W = x.shape
    return (x.reshape(B, C // f, f, H, W)
             .transpose(0, 1, 3, 2, 4)
             .reshape(B, C // f, H * f, W))


if __name__ == "__main__":
    factor = 2
    key = jax.random.PRNGKey(0)
    kx, kc = jax.random.split(key)
    x = jax.random.normal(kx, (2, 4, 16, 16), dtype=jnp.float32)      # NCHW
    cond = jax.random.normal(kc, (2, 6, 16, 16), dtype=jnp.float32)   # NCHW
    logdet = jnp.zeros((2,), dtype=jnp.float32)

    layer = SqueezeLayer(factor)

    # forward (reverse=False)
    out, cond_out, ld = layer(x, cond, logdet, reverse=False)
    jax.block_until_ready((out, cond_out, ld))
    assert out.shape == (2, 8, 8, 16)
    assert cond_out.shape == (2, 12, 8, 16)
    assert jnp.array_equal(out, _squeeze2d_ref(x, factor))
    assert jnp.array_equal(cond_out, _squeeze2d_ref(cond, factor))
    assert jnp.array_equal(ld, logdet)

    # reverse (unsqueeze2d) must exactly invert the forward pass
    x_rec, cond_rec, _ = layer(out, cond_out, logdet, reverse=True)
    jax.block_until_ready((x_rec, cond_rec))
    assert jnp.array_equal(x_rec, x)
    assert jnp.array_equal(cond_rec, cond)
    assert jnp.array_equal(x_rec, _unsqueeze2d_ref(out, factor))

    # standalone kernels, cond=None guard, squeeze_cond
    y = squeeze2d(x, factor)
    jax.block_until_ready(y)
    assert jnp.array_equal(y, _squeeze2d_ref(x, factor))
    assert jnp.array_equal(unsqueeze2d(y, factor), x)
    o2, c2, _ = layer(x, None, logdet, reverse=False)
    jax.block_until_ready(o2)
    assert c2 is None and jnp.array_equal(o2, _squeeze2d_ref(x, factor))
    assert jnp.array_equal(layer.squeeze_cond(cond), _squeeze2d_ref(cond, factor))

    # bf16 path (packed to uint32 inside the wrappers)
    xb = x.astype(jnp.bfloat16)
    yb = squeeze2d(xb, factor)
    jax.block_until_ready(yb)
    assert yb.dtype == jnp.bfloat16
    assert jnp.array_equal(yb, _squeeze2d_ref(xb, factor))
    assert jnp.array_equal(unsqueeze2d(yb, factor), xb)

    print("KERNEL_OK")
</pallas_src>

<mosaic_0001>
module attributes {stable_mosaic.version = 11 : i64} {
  func.func @_squeeze_kernel(%arg0: i32, %arg1: i32, %arg2: memref<1x4x8x32xf32, #tpu.memory_space<vmem>>, %arg3: memref<1x8x8x16xf32, #tpu.memory_space<vmem>>) attributes {dimension_semantics = [#tpu.dimension_semantics<parallel>, #tpu.dimension_semantics<parallel>], iteration_bounds = array<i64: 2, 1>, scalar_prefetch = 0 : i64, scratch_operands = 0 : i64, tpu.core_type = #tpu.core_type<tc>, window_params = [{transform_indices = @transform_0, window_bounds = array<i64: 1, 4, 8, 32>}, {transform_indices = @transform_1, window_bounds = array<i64: 1, 8, 8, 16>}]} {
    %c0 = arith.constant 0 : index
    %c0_0 = arith.constant 0 : index
    %c0_1 = arith.constant 0 : index
    %c0_2 = arith.constant 0 : index
    %0 = vector.load %arg2[%c0, %c0_0, %c0_1, %c0_2] : memref<1x4x8x32xf32, #tpu.memory_space<vmem>>, vector<1x1x8x16xf32>
    %1 = vector.shape_cast %0 : vector<1x1x8x16xf32> to vector<8x16xf32>
    %c0_3 = arith.constant 0 : index
    %c0_4 = arith.constant 0 : index
    %c0_5 = arith.constant 0 : index
    %c0_6 = arith.constant 0 : index
    %2 = vector.load %arg3[%c0_3, %c0_4, %c0_5, %c0_6] : memref<1x8x8x16xf32, #tpu.memory_space<vmem>>, vector<1x1x8x16xf32>
    %3 = vector.shape_cast %2 : vector<1x1x8x16xf32> to vector<8x16xf32>
    %4 = vector.shape_cast %1 : vector<8x16xf32> to vector<1x1x8x16xf32>
    tpu.vector_store %arg3[%c0_3, %c0_4, %c0_5, %c0_6], %4 {strides = array<i32>} : memref<1x8x8x16xf32, #tpu.memory_space<vmem>>, vector<1x1x8x16xf32>,
    %c0_7 = arith.constant 0 : index
    %c0_8 = arith.constant 0 : index
    %c0_9 = arith.constant 0 : index
    %c16 = arith.constant 16 : index
    %5 = vector.load %arg2[%c0_7, %c0_8, %c0_9, %c16] : memref<1x4x8x32xf32, #tpu.memory_space<vmem>>, vector<1x1x8x16xf32>
    %6 = vector.shape_cast %5 : vector<1x1x8x16xf32> to vector<8x16xf32>
    %c0_10 = arith.constant 0 : index
    %c1 = arith.constant 1 : index
    %c0_11 = arith.constant 0 : index
    %c0_12 = arith.constant 0 : index
    %7 = vector.load %arg3[%c0_10, %c1, %c0_11, %c0_12] : memref<1x8x8x16xf32, #tpu.memory_space<vmem>>, vector<1x1x8x16xf32>
    %8 = vector.shape_cast %7 : vector<1x1x8x16xf32> to vector<8x16xf32>
    %9 = vector.shape_cast %6 : vector<8x16xf32> to vector<1x1x8x16xf32>
    tpu.vector_store %arg3[%c0_10, %c1, %c0_11, %c0_12], %9 {strides = array<i32>} : memref<1x8x8x16xf32, #tpu.memory_space<vmem>>, vector<1x1x8x16xf32>,
    %c0_13 = arith.constant 0 : index
    %c1_14 = arith.constant 1 : index
    %c0_15 = arith.constant 0 : index
    %c0_16 = arith.constant 0 : index
    %10 = vector.load %arg2[%c0_13, %c1_14, %c0_15, %c0_16] : memref<1x4x8x32xf32, #tpu.memory_space<vmem>>, vector<1x1x8x16xf32>
    %11 = vector.shape_cast %10 : vector<1x1x8x16xf32> to vector<8x16xf32>
    %c0_17 = arith.constant 0 : index
    %c2 = arith.constant 2 : index
    %c0_18 = arith.constant 0 : index
    %c0_19 = arith.constant 0 : index
    %12 = vector.load %arg3[%c0_17, %c2, %c0_18, %c0_19] : memref<1x8x8x16xf32, #tpu.memory_space<vmem>>, vector<1x1x8x16xf32>
    %13 = vector.shape_cast %12 : vector<1x1x8x16xf32> to vector<8x16xf32>
    %14 = vector.shape_cast %11 : vector<8x16xf32> to vector<1x1x8x16xf32>
    tpu.vector_store %arg3[%c0_17, %c2, %c0_18, %c0_19], %14 {strides = array<i32>} : memref<1x8x8x16xf32, #tpu.memory_space<vmem>>, vector<1x1x8x16xf32>,
    %c0_20 = arith.constant 0 : index
    %c1_21 = arith.constant 1 : index
    %c0_22 = arith.constant 0 : index
    %c16_23 = arith.constant 16 : index
    %15 = vector.load %arg2[%c0_20, %c1_21, %c0_22, %c16_23] : memref<1x4x8x32xf32, #tpu.memory_space<vmem>>, vector<1x1x8x16xf32>
    %16 = vector.shape_cast %15 : vector<1x1x8x16xf32> to vector<8x16xf32>
    %c0_24 = arith.constant 0 : index
    %c3 = arith.constant 3 : index
    %c0_25 = arith.constant 0 : index
    %c0_26 = arith.constant 0 : index
    %17 = vector.load %arg3[%c0_24, %c3, %c0_25, %c0_26] : memref<1x8x8x16xf32, #tpu.memory_space<vmem>>, vector<1x1x8x16xf32>
    %18 = vector.shape_cast %17 : vector<1x1x8x16xf32> to vector<8x16xf32>
    %19 = vector.shape_cast %16 : vector<8x16xf32> to vector<1x1x8x16xf32>
    tpu.vector_store %arg3[%c0_24, %c3, %c0_25, %c0_26], %19 {strides = array<i32>} : memref<1x8x8x16xf32, #tpu.memory_space<vmem>>, vector<1x1x8x16xf32>,
    %c0_27 = arith.constant 0 : index
    %c2_28 = arith.constant 2 : index
    %c0_29 = arith.constant 0 : index
    %c0_30 = arith.constant 0 : index
    %20 = vector.load %arg2[%c0_27, %c2_28, %c0_29, %c0_30] : memref<1x4x8x32xf32, #tpu.memory_space<vmem>>, vector<1x1x8x16xf32>
    %21 = vector.shape_cast %20 : vector<1x1x8x16xf32> to vector<8x16xf32>
    %c0_31 = arith.constant 0 : index
    %c4 = arith.constant 4 : index
    %c0_32 = arith.constant 0 : index
    %c0_33 = arith.constant 0 : index
    %22 = vector.load %arg3[%c0_31, %c4, %c0_32, %c0_33] : memref<1x8x8x16xf32, #tpu.memory_space<vmem>>, vector<1x1x8x16xf32>
    %23 = vector.shape_cast %22 : vector<1x1x8x16xf32> to vector<8x16xf32>
    %24 = vector.shape_cast %21 : vector<8x16xf32> to vector<1x1x8x16xf32>
    tpu.vector_store %arg3[%c0_31, %c4, %c0_32, %c0_33], %24 {strides = array<i32>} : memref<1x8x8x16xf32, #tpu.memory_space<vmem>>, vector<1x1x8x16xf32>,
    %c0_34 = arith.constant 0 : index
    %c2_35 = arith.constant 2 : index
    %c0_36 = arith.constant 0 : index
    %c16_37 = arith.constant 16 : index
    %25 = vector.load %arg2[%c0_34, %c2_35, %c0_36, %c16_37] : memref<1x4x8x32xf32, #tpu.memory_space<vmem>>, vector<1x1x8x16xf32>
    %26 = vector.shape_cast %25 : vector<1x1x8x16xf32> to vector<8x16xf32>
    %c0_38 = arith.constant 0 : index
    %c5 = arith.constant 5 : index
    %c0_39 = arith.constant 0 : index
    %c0_40 = arith.constant 0 : index
    %27 = vector.load %arg3[%c0_38, %c5, %c0_39, %c0_40] : memref<1x8x8x16xf32, #tpu.memory_space<vmem>>, vector<1x1x8x16xf32>
    %28 = vector.shape_cast %27 : vector<1x1x8x16xf32> to vector<8x16xf32>
    %29 = vector.shape_cast %26 : vector<8x16xf32> to vector<1x1x8x16xf32>
    tpu.vector_store %arg3[%c0_38, %c5, %c0_39, %c0_40], %29 {strides = array<i32>} : memref<1x8x8x16xf32, #tpu.memory_space<vmem>>, vector<1x1x8x16xf32>,
    %c0_41 = arith.constant 0 : index
    %c3_42 = arith.constant 3 : index
    %c0_43 = arith.constant 0 : index
    %c0_44 = arith.constant 0 : index
    %30 = vector.load %arg2[%c0_41, %c3_42, %c0_43, %c0_44] : memref<1x4x8x32xf32, #tpu.memory_space<vmem>>, vector<1x1x8x16xf32>
    %31 = vector.shape_cast %30 : vector<1x1x8x16xf32> to vector<8x16xf32>
    %c0_45 = arith.constant 0 : index
    %c6 = arith.constant 6 : index
    %c0_46 = arith.constant 0 : index
    %c0_47 = arith.constant 0 : index
    %32 = vector.load %arg3[%c0_45, %c6, %c0_46, %c0_47] : memref<1x8x8x16xf32, #tpu.memory_space<vmem>>, vector<1x1x8x16xf32>
    %33 = vector.shape_cast %32 : vector<1x1x8x16xf32> to vector<8x16xf32>
    %34 = vector.shape_cast %31 : vector<8x16xf32> to vector<1x1x8x16xf32>
    tpu.vector_store %arg3[%c0_45, %c6, %c0_46, %c0_47], %34 {strides = array<i32>} : memref<1x8x8x16xf32, #tpu.memory_space<vmem>>, vector<1x1x8x16xf32>,
    %c0_48 = arith.constant 0 : index
    %c3_49 = arith.constant 3 : index
    %c0_50 = arith.constant 0 : index
    %c16_51 = arith.constant 16 : index
    %35 = vector.load %arg2[%c0_48, %c3_49, %c0_50, %c16_51] : memref<1x4x8x32xf32, #tpu.memory_space<vmem>>, vector<1x1x8x16xf32>
    %36 = vector.shape_cast %35 : vector<1x1x8x16xf32> to vector<8x16xf32>
    %c0_52 = arith.constant 0 : index
    %c7 = arith.constant 7 : index
    %c0_53 = arith.constant 0 : index
    %c0_54 = arith.constant 0 : index
    %37 = vector.load %arg3[%c0_52, %c7, %c0_53, %c0_54] : memref<1x8x8x16xf32, #tpu.memory_space<vmem>>, vector<1x1x8x16xf32>
    %38 = vector.shape_cast %37 : vector<1x1x8x16xf32> to vector<8x16xf32>
    %39 = vector.shape_cast %36 : vector<8x16xf32> to vector<1x1x8x16xf32>
    tpu.vector_store %arg3[%c0_52, %c7, %c0_53, %c0_54], %39 {strides = array<i32>} : memref<1x8x8x16xf32, #tpu.memory_space<vmem>>, vector<1x1x8x16xf32>,
    return
  }
  func.func @transform_0(%arg0: i32, %arg1: i32) -> (i32, i32, i32, i32) {
    %c0_i32 = arith.constant 0 : i32
    %c0_i32_0 = arith.constant 0 : i32
    %c0_i32_1 = arith.constant 0 : i32
    return %arg0, %arg1, %c0_i32, %c0_i32_0 : i32, i32, i32, i32
  }
  func.func @transform_1(%arg0: i32, %arg1: i32) -> (i32, i32, i32, i32) {
    %c0_i32 = arith.constant 0 : i32
    %c0_i32_0 = arith.constant 0 : i32
    %c0_i32_1 = arith.constant 0 : i32
    return %arg0, %arg1, %c0_i32, %c0_i32_0 : i32, i32, i32, i32
  }
}

</mosaic_0001>

<bundles_post_ra>
// kernel: tpu_custom_call.1
= control target key start
LH: loop header
LB: loop body
LE: loop exit
PB: predicated region body
PF: predicated region fallthrough
CT: control target
= control target key end

     0   :  { %6 = vsyncpa [#allocation3], 0  ;;  %s660_s0 = inlined_call_operand.hbm [shape: f32[2,4,8,32], index: 0, kind: input, shape index: {}]   ;;  %s661_s1 = inlined_call_operand.hbm [shape: f32[2,8,8,16], index: 1, kind: output, shape index: {}]  }
   0x1   :  { %8 = vsyncpa [#allocation3 + $0x1], 0 }
   0x2   :  { %9 = vsyncpa [#allocation4], 0 }
   0x3   :  { %11 = vsyncpa [#allocation4 + $0x1], 0  ;;  %s531_s6 = smov 0   ;;  %s533_s7 = smov 0  }
   0x4   :  { %s535_s8 = smov 0   ;;  %s537_s9 = smov 0  }
   0x5   :  { %s539_s10 = smov 0   ;;  %s541_s11 = smov 0  }
   0x6 LB: > { %s305_s12 = sadd.s32 4294967295, %s514_s11   ;;  %s306_s13 = sadd.s32 4294967294, %s514_s11   ;;  %s514_s11 = sphi %s541_s11, %s17_s11   ;;  %s510_s10 = sphi %s539_s10, %s670_s10   ;;  %s506_s9 = sphi %s537_s9, %s669_s9   ;;  %s502_s8 = sphi %s535_s8, %s668_s8   ;;  %s498_s7 = sphi %s533_s7, %s667_s7   ;;  %s494_s6 = sphi %s531_s6, %s666_s6  }
   0x7   : > { %s29_s14 = sadd.s32 1, %s510_s10  ;;  %s38_s15 = sadd.s32 1, %s502_s8 }
   0x8   : > { %p31_p0 = scmp.ge.s32.totalorder %s29_s14, 2  ;;  %p45_p1 = scmp.ne.s32.totalorder %s502_s8, %s498_s7 }
   0x9   : > { %p46_p2 = scmp.eq.s32.totalorder %s514_s11, 0  ;;  %p51_p3 = scmp.ne.s32.totalorder %s498_s7, %s494_s6 }
   0xa   : > { %s672_s14 = smov (%p31_p0, %s29_s14), 0  ;;  %p52_p5 = scmp.eq.s32.totalorder %s305_s12, 0 }
   0xb   : > { %p572_p4 = por %p46_p2, %p45_p1  ;;  %s33_s17 = ssub.s32 %s510_s10, %s672_s14 }
   0xc   : > { %p77_p6 = scmp.eq.s32.totalorder %s305_s12, 1  ;;  %p36_p7 = scmp.eq.s32.totalorder %s33_s17, 0 }
   0xd   : > { %p578_p8 = por %p52_p5, %p51_p3  ;;  %p83_p10 = scmp.eq.s32.totalorder %s306_s13, 1 }
   0xe   : > { %p582_p9 = por %p77_p6, %p45_p1  ;;  %p308_p12 = scmp.ge.s32.totalorder %s514_s11, 2 }
   0xf   : > { %s587_s20 = scalar_select %p36_p7, %s502_s8, %s38_s15  }
  0x10   : > { %p589_p11 = por %p83_p10, %p51_p3  ;;  %p347_p13 = scmp.lt.s32.totalorder %s514_s11, 2 }
  0x11   : > { %s103_s22 = sand.u32 1, %s502_s8   ;;  %s333_s24 = sshll.u32 %s510_s10, 5 }
  0x12   : > { %s309_s23 = sshll.u32 %s103_s22, 5  ;;  %s114_s27 = scalar_lea.hbm %s660_s0, %s333_s24 }
  0x13   : > { %s107_s28 = scalar_lea.vmem [#allocation2], %s309_s23  ;;  %s115_s30 = sshll.u32 %s114_s27, 4  ;;  %s116_s30 = int_to_ptr.hbm [resolvable:$true] %s115_s30 }
  0x14   : > { %s117_s29 = sshll.u32 %s107_s28, 4  ;;  %p340_p0 = pnand %p347_p13, %p572_p4  ;;  %s118_s29 = int_to_ptr.vmem [resolvable:$true] %s117_s29 }
  0x15   : > { %p312_p1 = scmp.ge.s32.totalorder %s514_s11, 1  ;;  %s104_s2 = scalar_lea.sflag [#allocation3], %s103_s22 }
  0x16   : > { %s516_s3 = smov 128   ;;  %s517_s4 = smov 8  }
  0x17   : > { %342 = dma.hbm_to_vmem [thread:$0]  (!%p340_p0), %s116_s30, 512, %s118_s29, %s104_s2, %s516_s3, %s516_s3, %s517_s4  }
  0x18   : > { %p125_p2 = scmp.lt.s32.totalorder %s514_s11, 3 }
  0x1a   : > { %p126_p3 = pnand %p312_p1, %p125_p2 }
  0x1b   : > { %s605_s5 = sand.u32 (!%p126_p3), 1, %s498_s7  }
  0x1c   : > { %129 = sbr.rel (%p126_p3) target bundleno = 163 (0xa3), region = 24  ;;  %s313_s12 = sshll.u32 (!%p126_p3), %s605_s5, 5 }
  0x1d   : > { %s132_s13 = scalar_lea.sflag (!%p126_p3), [#allocation3], %s605_s5  ;;  %s135_s15 = scalar_lea.vmem (!%p126_p3), [#allocation2], %s313_s12 }
  0x21   : > { %485 = dma.done.wait (%p578_p8), %s132_s13, 512  }
  0x22   : > { %487 = vsyncadd (%p578_p8), %s132_s13, 4294966784  ;;  %s314_s16 = sshll.u32 %s605_s5, 6  ;;  %v322_v0 = vld [vmem:[%s135_s15 + $0x10] sm:$0xff]  ;;  %v160_v1 = vld [vmem:[%s135_s15] sm:$0xff]  ;;  %vm158_vm0 = vcmask 130048   ;;  %s518_s17 = smov 112  }
  0x23   : > { %v326_v2 = vld [vmem:[%s135_s15 + $0x18] sm:$0xff]  ;;  %184 = vrot.lane.b32.xlu1 %v322_v0, %s518_s17  ;;  %162 = vrot.lane.b32.xlu0 %v160_v1, %s518_s17  ;;  %s154_s22 = scalar_lea.vmem [#allocation5], %s314_s16  ;;  %v318_v3 = vld [vmem:[%s135_s15 + $0x8] sm:$0xff]  ;;  %s334_s18 = sshll.u32 %s506_s9, 6 }
  0x24   : > { %325 = vst.msk [vmem:[%s154_s22 + $0x30] sm:$0xff] %vm158_vm0, %v326_v2  ;;  %s214_s25 = scalar_lea.hbm %s661_s1, %s334_s18  ;;  %s215_s26 = sshll.u32 %s154_s22, 4  ;;  %s216_s26 = int_to_ptr.vmem [resolvable:$true] %s215_s26 }
  0x25   : > { %159 = vst.msk [vmem:[%s154_s22] sm:$0xff] %vm158_vm0, %v160_v1  ;;  %s217_s27 = sshll.u32 %s214_s25, 4  ;;  %s201_s9 = scalar_lea.sflag [#allocation4], %s605_s5  ;;  %s218_s27 = int_to_ptr.hbm [resolvable:$true] %s217_s27 }
  0x26   : > { %317 = vst.msk [vmem:[%s154_s22 + $0x10] sm:$0xff] %vm158_vm0, %v318_v3  ;;  %s446_s28 = sshra.s32 %s218_s27, 4  ;;  %s452_s3 = scalar_lea.hbm %s661_s1, 128  ;;  %s447_s28 = int_to_ptr.hbm [resolvable:$true] %s446_s28 }
  0x27   : > { %321 = vst.msk [vmem:[%s154_s22 + $0x20] sm:$0xff] %vm158_vm0, %v322_v0  ;;  %s448_s29 = scalar_lea.hbm %s447_s28, 64  ;;  %p453_p7 = scmp.lt.s32.totalorder %s447_s28, %s661_s1 }
  0x28   : > { %p449_p4 = scmp.ne.s32.totalorder %s447_s28, %s448_s29  ;;  %p454_p8 = scmp.lt.s32.totalorder %s452_s3, %s448_s29 }
  0x2a   : > { %p450_p5 = pnand %p449_p4, %p582_p9  ;;  %p455_p10 = por %p454_p8, %p453_p7 }
  0x2b   : > { %195 = vrot.lane.b32.xlu1 %v326_v2, %s518_s17  ;;  %173 = vrot.lane.b32.xlu0 %v318_v3, %s518_s17 }
  0x2c   : > { %p451_p6 = pneg %p450_p5 }
  0x2e   : > { %p456_p13 = pnand %p455_p10, %p451_p6 }
  0x95   : > { %v185_v4 = vpop.permute.xlu1 %184  ;;  %v163_v5 = vpop.permute.xlu0 %162 }
  0x96   : > { %323 = vst.msk [vmem:[%s154_s22 + $0x28] sm:$0xff] %vm158_vm0, %v185_v4 }
  0x97   : > { %315 = vst.msk [vmem:[%s154_s22 + $0x8] sm:$0xff] %vm158_vm0, %v163_v5 }
  0x9d   : > { %v196_v6 = vpop.permute.xlu1 %195  ;;  %v174_v7 = vpop.permute.xlu0 %173 }
  0x9e   : > { %327 = vst.msk [vmem:[%s154_s22 + $0x38] sm:$0xff] %vm158_vm0, %v196_v6 }
  0x9f   : > { %319 = vst.msk [vmem:[%s154_s22 + $0x18] sm:$0xff] %vm158_vm0, %v174_v7 }
  0xa0   : > { %459 = shalt.err (!%p456_p13)
}
  0xa1   : > { %s519_s5 = smov 128   ;;  %s520_s13 = smov 8  }
  0xa2   : > { %337 = dma.vmem_to_hbm [thread:$0]  (%p582_p9), %s216_s26, 1024, %s218_s27, %s201_s9, %s519_s5, %s519_s5, %s520_s13  }
  0xa3 PF: > { %s232_s15 = sand.u32 1, %s494_s6   ;;  %p344_p0 = pnand %p308_p12, %p589_p11 }
  0xa4   : > { %s233_s16 = scalar_lea.sflag [#allocation4], %s232_s15 }
  0xa5   : > { %p345_p1 = pneg %p344_p0 }
  0xa7   : > { %489 = dma.done.wait (%p345_p1), %s233_s16, 1024  }
  0xa8   : > { %491 = vsyncadd (%p345_p1), %s233_s16, 4294966272  ;;  %s17_s11 = sadd.s32 1, %s514_s11   ;;  %s666_s6 = smov %s498_s7 }
  0xa9   : > { %p14_p2 = scmp.ge.s32.totalorder %s17_s11, 4   ;;  %s667_s7 = smov %s502_s8 }
  0xaa   : > { %s668_s8 = smov %s587_s20  ;;  %s669_s9 = smov %s510_s10 }
  0xab   : > { %s670_s10 = smov %s672_s14  ;;  %16 = sbr.rel (!%p14_p2) target bundleno = 6 (0x6), region = 79 }
  0xb0   :  { %239 = vsyncpa [#allocation3], 1 }
  0xb1   :  { %241 = vsyncpa [#allocation3 + $0x1], 1 }
  0xb2   :  { %242 = vsyncpa [#allocation4], 1 }
  0xb3   :  { %244 = vsyncpa [#allocation4 + $0x1], 1 }

</bundles_post_ra>
